<compile_context>
chip_gen: v5e
topology: v5e:2x2
jax: 0.10.0
libtpu: 0.0.40
codegen_flags: <defaults>
</compile_context>

<pallas_src>
import jax
import jax.numpy as jnp
from jax import lax
from jax.experimental import pallas as pl
from jax.experimental.pallas import tpu as pltpu

_LANES = 128   # vreg lane width
_CHUNK = 64    # rows per inner accumulation chunk: multiple of 32 (covers
               # f32/bf16/int8 sublane packing), 8 f32 vregs per input


def _make_rmse_kernel(rows_valid: int, tile_rows: int, mask_needed: bool):
    assert tile_rows % _CHUNK == 0
    n_chunks = tile_rows // _CHUNK

    def tile_sum(yhat_ref, y_ref, out_ref, row0, masked: bool):
        def body(j, acc):
            r = pl.multiple_of(j * _CHUNK, _CHUNK)
            a = yhat_ref[pl.ds(r, _CHUNK), :].astype(jnp.float32)
            b = y_ref[pl.ds(r, _CHUNK), :].astype(jnp.float32)
            d = a - b
            d2 = d * d
            if masked:
                # Zero rows past the logical end of the data (garbage in the
                # partial last block).  Select (not multiply) so NaN/Inf
                # garbage cannot leak through.
                ridx = row0 + r + lax.broadcasted_iota(
                    jnp.int32, (_CHUNK, _LANES), 0)
                d2 = jnp.where(ridx < rows_valid, d2, 0.0)
            return acc + d2

        acc = lax.fori_loop(
            0, n_chunks, body,
            jnp.zeros((_CHUNK, _LANES), jnp.float32),
            unroll=min(8, n_chunks))
        # Fold the (64,128) chunk accumulator into the resident (8,128)
        # output block: pure sublane-group VPU adds, done once per tile.
        out_ref[...] += acc.reshape(_CHUNK // 8, 8, _LANES).sum(axis=0)

    def kernel(yhat_ref, y_ref, out_ref):
        i = pl.program_id(0)

        @pl.when(i == 0)
        def _():
            out_ref[...] = jnp.zeros_like(out_ref)

        row0 = i * tile_rows

        if not mask_needed:
            tile_sum(yhat_ref, y_ref, out_ref, row0, masked=False)
        else:
            is_tail = (row0 + tile_rows) > rows_valid

            @pl.when(jnp.logical_not(is_tail))
            def _():
                tile_sum(yhat_ref, y_ref, out_ref, row0, masked=False)

            @pl.when(is_tail)
            def _():
                tile_sum(yhat_ref, y_ref, out_ref, row0, masked=True)

    return kernel


def rmse_loss(yhat, y, *, max_tile_rows: int = 8192,
              min_kernel_elems: int = 65536):
    """sqrt(mean((yhat - y)^2)) — matches torch.sqrt(nn.MSELoss()(yhat, y))."""
    assert yhat.shape == y.shape, "yhat and y must have the same shape"
    assert max_tile_rows % _CHUNK == 0
    n = int(yhat.size)
    assert n > 0

    # Tiny inputs: a single fused XLA reduce beats launch + one ~600-cycle
    # grid step + the host-side finalize.
    if n < min_kernel_elems:
        d = yhat.astype(jnp.float32) - y.astype(jnp.float32)
        return jnp.sqrt(jnp.mean(d * d))

    rows = -(-n // _LANES)
    if rows <= max_tile_rows:
        # Single-tile path: round rows to a chunk multiple (also satisfies
        # bf16/int8 sublane packing); padded zeros contribute 0 -> no mask.
        rows_p = -(-rows // _CHUNK) * _CHUNK
        tile_rows = rows_p
        mask_needed = False
    else:
        # Streaming path: no row rounding (no full-array pad when n%128==0);
        # the partial last tile is masked in-kernel.
        rows_p = rows
        tile_rows = max_tile_rows
        mask_needed = (rows_p % tile_rows) != 0

    pad = rows_p * _LANES - n
    yh = yhat.reshape(-1)
    yy = y.reshape(-1)
    if pad:  # only when numel % 128 != 0 (or rounding in the small path)
        yh = jnp.pad(yh, (0, pad))
        yy = jnp.pad(yy, (0, pad))
    yh2 = yh.reshape(rows_p, _LANES)
    yy2 = yy.reshape(rows_p, _LANES)

    num_blocks = -(-rows_p // tile_rows)

    itemsize = jnp.dtype(yhat.dtype).itemsize
    tile_bytes = tile_rows * _LANES * itemsize
    # 2 inputs x 2 pipeline buffers + headroom; >= every generation's scoped
    # default, well under v7x's 64 MiB physical per-TC VMEM.
    vmem_limit = int(min(100 << 20, max(32 << 20, 4 * tile_bytes + (8 << 20))))

    cost = pl.CostEstimate(
        flops=3 * n,                                  # sub, mul, add
        transcendentals=0,
        bytes_accessed=2 * n * itemsize + 8 * _LANES * 4)

    # TODO(synk): on v7x, shard the reduction across the two TensorCores with
    # pltpu.CORE_PARALLEL on a leading grid axis; kept single-core here so the
    # identical code runs cleanly on 1-TC v5e/v6e.
    partials = pl.pallas_call(
        _make_rmse_kernel(rows_p, tile_rows, mask_needed),
        out_shape=jax.ShapeDtypeStruct((8, _LANES), jnp.float32),
        grid_spec=pltpu.PrefetchScalarGridSpec(
            num_scalar_prefetch=0,
            grid=(num_blocks,),
            in_specs=[
                pl.BlockSpec((tile_rows, _LANES), lambda i: (i, 0)),
                pl.BlockSpec((tile_rows, _LANES), lambda i: (i, 0)),
            ],
            out_specs=pl.BlockSpec((8, _LANES), lambda i: (0, 0)),
        ),
        compiler_params=pltpu.CompilerParams(
            dimension_semantics=("arbitrary",),
            vmem_limit_bytes=vmem_limit,
        ),
        cost_estimate=cost,
    )(yh2, yy2)

    return jnp.sqrt(jnp.sum(partials) / n)


def _ref(yhat, y):
    d = yhat.astype(jnp.float32) - y.astype(jnp.float32)
    return jnp.sqrt(jnp.mean(d * d))


if __name__ == "__main__":
    key = jax.random.PRNGKey(0)
    ks = jax.random.split(key, 10)

    # --- main example: small NCHW regression output, f32 (force kernel path) --
    shape = (2, 4, 16, 16)
    yhat = jax.random.normal(ks[0], shape, dtype=jnp.float32)
    y = jax.random.normal(ks[1], shape, dtype=jnp.float32)
    loss = jax.block_until_ready(rmse_loss(yhat, y, min_kernel_elems=0))
    assert jnp.allclose(loss, _ref(yhat, y), rtol=1e-5, atol=1e-6)

    # --- same small example through the default pure-JAX fast path -----------
    loss_fp = jax.block_until_ready(rmse_loss(yhat, y))
    assert jnp.allclose(loss_fp, _ref(yhat, y), rtol=1e-5, atol=1e-6)

    # --- medium input: single-tile kernel path (5000 rows -> rounded 5056) ---
    shape_m = (8, 10, 80, 100)                       # 640_000 elements
    yhat_m = jax.random.normal(ks[2], shape_m, dtype=jnp.float32)
    y_m = jax.random.normal(ks[3], shape_m, dtype=jnp.float32)
    loss_m = jax.block_until_ready(rmse_loss(yhat_m, y_m, min_kernel_elems=0))
    assert jnp.allclose(loss_m, _ref(yhat_m, y_m), rtol=1e-5, atol=1e-6)

    # --- streaming + masked-tail path (small tiles to exercise multi-block) --
    loss_s = jax.block_until_ready(
        rmse_loss(yhat_m, y_m, max_tile_rows=512, min_kernel_elems=0))
    assert jnp.allclose(loss_s, _ref(yhat_m, y_m), rtol=1e-5, atol=1e-6)

    # --- ragged size (numel % 128 != 0): zero-pad tail path -------------------
    shape_o = (3, 5, 7)
    yhat_o = jax.random.normal(ks[4], shape_o, dtype=jnp.float32)
    y_o = jax.random.normal(ks[5], shape_o, dtype=jnp.float32)
    loss_o = jax.block_until_ready(rmse_loss(yhat_o, y_o, min_kernel_elems=0))
    assert jnp.allclose(loss_o, _ref(yhat_o, y_o), rtol=1e-5, atol=1e-6)
    loss_o_fp = jax.block_until_ready(rmse_loss(yhat_o, y_o))   # JAX fast path
    assert jnp.allclose(loss_o_fp, _ref(yhat_o, y_o), rtol=1e-5, atol=1e-6)

    # --- bf16 inputs: sub-32-bit packing / in-kernel upcast path --------------
    shape_b = (4, 8, 32, 32)                          # 32_768 elements
    yhat_b = jax.random.normal(ks[6], shape_b, dtype=jnp.bfloat16)
    y_b = jax.random.normal(ks[7], shape_b, dtype=jnp.bfloat16)
    loss_b = jax.block_until_ready(rmse_loss(yhat_b, y_b, min_kernel_elems=0))
    assert jnp.allclose(loss_b, _ref(yhat_b, y_b), rtol=1e-4, atol=1e-5)

    print("KERNEL_OK")
</pallas_src>

<mosaic_0001>
module attributes {stable_mosaic.version = 11 : i64} {
  func.func @kernel(%arg0: i32, %arg1: memref<64x128xf32, #tpu.memory_space<vmem>>, %arg2: memref<64x128xf32, #tpu.memory_space<vmem>>, %arg3: memref<8x128xf32, #tpu.memory_space<vmem>>) attributes {dimension_semantics = [#tpu.dimension_semantics<arbitrary>], iteration_bounds = array<i64: 1>, scalar_prefetch = 0 : i64, scratch_operands = 0 : i64, tpu.core_type = #tpu.core_type<tc>, window_params = [{transform_indices = @transform_0, window_bounds = array<i64: 64, 128>}, {transform_indices = @transform_1, window_bounds = array<i64: 64, 128>}, {pipeline_mode = #tpu.pipeline_mode<synchronous>, transform_indices = @transform_2, window_bounds = array<i64: 8, 128>}]} {
    %c0_i32 = arith.constant 0 : i32
    %0 = arith.cmpi eq, %arg0, %c0_i32 : i32
    %1 = arith.extui %0 : i1 to i32
    %c0_i32_0 = arith.constant 0 : i32
    %2 = arith.cmpi ne, %1, %c0_i32_0 : i32
    scf.if %2 {
      %cst_8 = arith.constant 0.000000e+00 : f32
      %18 = vector.broadcast %cst_8 : f32 to vector<8x128xf32>
      %c0_9 = arith.constant 0 : index
      %c0_10 = arith.constant 0 : index
      %19 = vector.load %arg3[%c0_9, %c0_10] : memref<8x128xf32, #tpu.memory_space<vmem>>, vector<8x128xf32>
      tpu.vector_store %arg3[%c0_9, %c0_10], %18 {strides = array<i32>} : memref<8x128xf32, #tpu.memory_space<vmem>>, vector<8x128xf32>,
    } else {
    }
    %cst = arith.constant 0.000000e+00 : f32
    %3 = vector.broadcast %cst : f32 to vector<64x128xf32>
    %c0_i32_1 = arith.constant 0 : i32
    %c64_i32 = arith.constant 64 : i32
    %4 = arith.muli %c0_i32_1, %c64_i32 : i32
    %5 = tpu.assume_multiple %4, 64 : i32
    %6 = arith.index_cast %5 : i32 to index
    %c0 = arith.constant 0 : index
    %7 = vector.load %arg1[%6, %c0] : memref<64x128xf32, #tpu.memory_space<vmem>>, vector<64x128xf32>
    %8 = arith.index_cast %5 : i32 to index
    %c0_2 = arith.constant 0 : index
    %9 = vector.load %arg2[%8, %c0_2] : memref<64x128xf32, #tpu.memory_space<vmem>>, vector<64x128xf32>
    %10 = arith.subf %7, %9 : vector<64x128xf32>
    %11 = arith.mulf %10, %10 : vector<64x128xf32>
    %12 = arith.addf %3, %11 : vector<64x128xf32>
    %c1_i32 = arith.constant 1 : i32
    %c0_3 = arith.constant 0 : index
    %c0_4 = arith.constant 0 : index
    %13 = vector.load %arg3[%c0_3, %c0_4] : memref<8x128xf32, #tpu.memory_space<vmem>>, vector<8x128xf32>
    %14 = vector.shape_cast %12 : vector<64x128xf32> to vector<8x8x128xf32>
    %cst_5 = arith.constant dense<0.000000e+00> : vector<8x128xf32>
    %15 = vector.multi_reduction <add>, %14, %cst_5 [0] : vector<8x8x128xf32> to vector<8x128xf32>
    %16 = arith.addf %13, %15 : vector<8x128xf32>
    %c0_6 = arith.constant 0 : index
    %c0_7 = arith.constant 0 : index
    %17 = vector.load %arg3[%c0_6, %c0_7] : memref<8x128xf32, #tpu.memory_space<vmem>>, vector<8x128xf32>
    tpu.vector_store %arg3[%c0_6, %c0_7], %16 {strides = array<i32>} : memref<8x128xf32, #tpu.memory_space<vmem>>, vector<8x128xf32>,
    return
  }
  func.func @transform_0(%arg0: i32) -> (i32, i32) {
    %c0_i32 = arith.constant 0 : i32
    %c0_i32_0 = arith.constant 0 : i32
    return %arg0, %c0_i32 : i32, i32
  }
  func.func @transform_1(%arg0: i32) -> (i32, i32) {
    %c0_i32 = arith.constant 0 : i32
    %c0_i32_0 = arith.constant 0 : i32
    return %arg0, %c0_i32 : i32, i32
  }
  func.func @transform_2(%arg0: i32) -> (i32, i32) {
    %c0_i32 = arith.constant 0 : i32
    %c0_i32_0 = arith.constant 0 : i32
    %c0_i32_1 = arith.constant 0 : i32
    return %c0_i32, %c0_i32_0 : i32, i32
  }
}

</mosaic_0001>

<bundles_post_ra>
// kernel: tpu_custom_call.1
= control target key start
LH: loop header
LB: loop body
LE: loop exit
PB: predicated region body
PF: predicated region fallthrough
CT: control target
= control target key end

     0   :  { %7 = vsyncpa [#allocation3], 0  ;;  %s230_s0 = inlined_call_operand.hbm [shape: f32[64,128], index: 0, kind: input, shape index: {}]   ;;  %s231_s1 = inlined_call_operand.hbm [shape: f32[64,128], index: 1, kind: input, shape index: {}]   ;;  %s232_s2 = inlined_call_operand.hbm [shape: f32[8,128], index: 2, kind: output, shape index: {}]  }
   0x1   :  { %8 = vsyncpa [#allocation6], 0 }
   0x2   :  { %9 = vsyncpa [#allocation4], 0  ;;  %s14_s11 = sshll.u32 %s230_s0, 4  ;;  %s201_s12 = smov [#allocation2]   ;;  %s15_s11 = int_to_ptr.hbm [resolvable:$true] %s14_s11 }
   0x3   :  { %s16_s13 = sshll.u32 %s201_s12, 4  ;;  %s27_s16 = sshll.u32 %s231_s1, 4  ;;  %s17_s13 = int_to_ptr.vmem [resolvable:$true] %s16_s13  ;;  %s28_s16 = int_to_ptr.hbm [resolvable:$true] %s27_s16 }
   0x4   :  { %s202_s17 = smov 128   ;;  %s203_s18 = smov 8  }
   0x5   :  { %22 = dma.hbm_to_vmem [thread:$0]  %s15_s11, 1024, %s17_s13, [#allocation3], %s202_s17, %s202_s17, %s203_s18  }
   0x6   :  { %s204_s19 = smov [#allocation5]  }
   0x7   :  { %s29_s20 = sshll.u32 %s204_s19, 4  ;;  %s30_s20 = int_to_ptr.vmem [resolvable:$true] %s29_s20 }
   0x8   :  { %35 = dma.hbm_to_vmem [thread:$0]  %s28_s16, 1024, %s30_s20, [#allocation6], %s202_s17, %s202_s17, %s203_s18  }
   0x9   :  { %195 = dma.done.wait [#allocation3], 1024  }
   0xa   :  { %196 = vsyncadd [#allocation3], 4294966272 }
   0xb   :  { %197 = dma.done.wait [#allocation6], 1024  }
   0xc   :  { %198 = vsyncadd [#allocation6], 4294966272  ;;  %v49_v0 = vld [vmem:[#allocation2] sm:$0xff]  ;;  %v50_v1 = vld [vmem:[#allocation2 + $0x8] sm:$0xff]  ;;  %s205_s0 = smov [#allocation7]   ;;  %s106_s23 = sshll.u32 %s232_s2, 4  ;;  %s107_s23 = int_to_ptr.hbm [resolvable:$true] %s106_s23 }
   0xd   :  { %v51_v2 = vld [vmem:[#allocation2 + $0x10] sm:$0xff]  ;;  %v52_v3 = vld [vmem:[#allocation2 + $0x18] sm:$0xff]  ;;  %v53_v4 = vld [vmem:[#allocation2 + $0x20] sm:$0xff]  ;;  %s104_s1 = sshll.u32 %s205_s0, 4  ;;  %s105_s1 = int_to_ptr.vmem [resolvable:$true] %s104_s1 }
   0xe   :  { %v57_v5 = vld [vmem:[#allocation5] sm:$0xff]  ;;  %v58_v6 = vld [vmem:[#allocation5 + $0x8] sm:$0xff]  ;;  %v59_v7 = vld [vmem:[#allocation5 + $0x10] sm:$0xff] }
   0xf   :  { %v60_v8 = vld [vmem:[#allocation5 + $0x18] sm:$0xff]  ;;  %v65_v9 = vsub.f32 %v49_v0, %v57_v5  ;;  %v61_v10 = vld [vmem:[#allocation5 + $0x20] sm:$0xff]  ;;  %v66_v11 = vsub.f32 %v50_v1, %v58_v6  ;;  %v67_v12 = vsub.f32 %v51_v2, %v59_v7  ;;  %v54_v14 = vld [vmem:[#allocation2 + $0x28] sm:$0xff] }
  0x10   :  { %v68_v13 = vsub.f32 %v52_v3, %v60_v8  ;;  %v62_v15 = vld [vmem:[#allocation5 + $0x28] sm:$0xff]  ;;  %v69_v17 = vsub.f32 %v53_v4, %v61_v10  ;;  %v55_v20 = vld [vmem:[#allocation2 + $0x30] sm:$0xff]  ;;  %v56_v25 = vld [vmem:[#allocation2 + $0x38] sm:$0xff] }
  0x11   :  { %v73_v16 = vmul.f32 %v65_v9, %v65_v9  ;;  %v74_v18 = vmul.f32 %v66_v11, %v66_v11  ;;  %v75_v19 = vmul.f32 %v67_v12, %v67_v12  ;;  %v63_v21 = vld [vmem:[#allocation5 + $0x30] sm:$0xff]  ;;  %v70_v22 = vsub.f32 %v54_v14, %v62_v15  ;;  %v64_v26 = vld [vmem:[#allocation5 + $0x38] sm:$0xff] }
  0x12   :  { %v76_v23 = vmul.f32 %v68_v13, %v68_v13  ;;  %v71_v27 = vsub.f32 %v55_v20, %v63_v21  ;;  %v77_v28 = vmul.f32 %v69_v17, %v69_v17  ;;  %v72_v30 = vsub.f32 %v56_v25, %v64_v26 }
  0x13   :  { %v90_v24 = vadd.f32 %v74_v18, %v73_v16  ;;  %v78_v31 = vmul.f32 %v70_v22, %v70_v22 }
  0x14   :  { %v79_v33 = vmul.f32 %v71_v27, %v71_v27  ;;  %v80_v35 = vmul.f32 %v72_v30, %v72_v30 }
  0x15   :  { %v91_v29 = vadd.f32 %v90_v24, %v75_v19 }
  0x17   :  { %v92_v32 = vadd.f32 %v91_v29, %v76_v23 }
  0x19   :  { %v93_v34 = vadd.f32 %v92_v32, %v77_v28 }
  0x1b   :  { %v94_v36 = vadd.f32 %v93_v34, %v78_v31 }
  0x1d   :  { %v95_v37 = vadd.f32 %v94_v36, %v79_v33 }
  0x1f   :  { %v96_v38 = vadd.f32 %v95_v37, %v80_v35 }
  0x21   :  { %98 = vst [vmem:[#allocation7] sm:$0xff] %v96_v38 }
  0x22   :  { %109 = dma.vmem_to_hbm [thread:$0]  %s105_s1, 128, %s107_s23, [#allocation4]  }
  0x23   :  { %199 = dma.done.wait [#allocation4], 128  }
  0x24   :  { %200 = vsyncadd [#allocation4], 4294967168 }
  0x25   :  { %114 = vsyncpa [#allocation3], 1 }
  0x26   :  { %115 = vsyncpa [#allocation6], 1 }
  0x27   :  { %116 = vsyncpa [#allocation4], 1 }

</bundles_post_ra>
